<compile_context>
chip_gen: v7x
topology: tpu7x:2x2x1
jax: 0.10.0
libtpu: 0.0.40
codegen_flags: <defaults>
</compile_context>

<pallas_src>
import jax
import jax.numpy as jnp
from jax.experimental import pallas as pl
from jax.experimental.pallas import tpu as pltpu

_LANES = 128


def _mish_kernel(x_ref, o_ref):
    x = x_ref[...].astype(jnp.float32)
    # tanh(softplus(x)) == t*(t+2) / (t*(t+2) + 2)  with t = exp(x).
    # Clamp at 20 (torch.nn.Softplus threshold): for x > 20 the ratio is 1.0 to
    # f32 precision and the clamp keeps exp() from overflowing.
    t = jnp.exp(jnp.minimum(x, 20.0))
    num = t * (t + 2.0)
    o_ref[...] = (x * (num / (num + 2.0))).astype(o_ref.dtype)


def _device_info():
    """(device_kind lowercase, #TensorCores a 'parallel' grid axis shards over)."""
    try:
        kind = jax.devices()[0].device_kind.lower()
    except Exception:
        kind = ""
    two_tc = ("v7" in kind) or ("7x" in kind) or ("v4" in kind)
    return kind, (2 if two_tc else 1)


def _tile_rows(rows: int, itemsize: int) -> int:
    """Rows-of-128-lanes per block, tuned per TPU generation + megacore."""
    kind, n_cores = _device_info()
    # Per-generation block budget (in f32-equivalent rows):
    #   v6e / v7x: 8192 rows -> 4 MiB f32 block (16 MiB double-buffered in+out,
    #              under the 32 MiB scoped-VMEM default).
    #   v5e / unknown / interpret: 4096 rows -> 2 MiB block (8 MiB total, safe
    #              under v5e's 16 MiB scoped-VMEM default, no flags needed).
    big_vmem = ("v6" in kind) or ("v7" in kind) or ("7x" in kind)
    tr = 8192 if big_vmem else 4096

    # Sub-32-bit dtypes pack along sublanes: keep the row tile a multiple of
    # 16 (bf16/f16) or 32 (int8/fp8) to avoid masked packed partial stores.
    row_align = {4: 8, 2: 16, 1: 32}.get(itemsize, 8)

    # Megacore: on 2-TC chips target >= 2 grid steps per core so the per-core
    # software pipeline (prefetch i+1 / writeback i-1) engages, but never shrink
    # below ~1 MiB (2048-row) blocks. Single-TC chips keep the full-size block.
    if n_cores > 1:
        want = -(-rows // (2 * n_cores))             # cdiv
        want = -(-want // row_align) * row_align     # align up
        tr = max(min(tr, want), 2048)

    if tr >= rows:
        tr = rows  # one full-extent block (a full array dim is always legal)
    return tr


def mish(x: jax.Array) -> jax.Array:
    """Elementwise Mish (x * tanh(softplus(x))) via a Pallas TPU kernel.

    Works for any shape/float dtype. HBM traffic stays in the input dtype;
    compute is f32 in-vreg.
    """
    orig_shape = x.shape
    dtype = x.dtype
    n = x.size
    if n == 0:
        return x
    itemsize = jnp.dtype(dtype).itemsize

    cost = pl.CostEstimate(flops=8 * n, transcendentals=n,
                           bytes_accessed=2 * n * itemsize)
    cparams = pltpu.CompilerParams(dimension_semantics=("parallel",))

    if n % _LANES == 0:
        # Common case: free (rows, 128) bitcast reshape, lane-dense 2-D blocks.
        rows = n // _LANES
        tr = _tile_rows(rows, itemsize)
        y = pl.pallas_call(
            _mish_kernel,
            out_shape=jax.ShapeDtypeStruct((rows, _LANES), dtype),
            grid_spec=pltpu.PrefetchScalarGridSpec(
                num_scalar_prefetch=0,
                grid=(pl.cdiv(rows, tr),),
                in_specs=[pl.BlockSpec((tr, _LANES), lambda i: (i, 0))],
                out_specs=pl.BlockSpec((tr, _LANES), lambda i: (i, 0)),
            ),
            compiler_params=cparams,
            cost_estimate=cost,
        )(x.reshape(rows, _LANES))
        return y.reshape(orig_shape)

    # Ragged case (n % 128 != 0): tile the flat 1-D array directly and let
    # Pallas mask the partial final block — no host-side pad/slice round trips.
    tr = _tile_rows(pl.cdiv(n, _LANES), itemsize)
    blk = min(tr * _LANES, n)
    y = pl.pallas_call(
        _mish_kernel,
        out_shape=jax.ShapeDtypeStruct((n,), dtype),
        grid_spec=pltpu.PrefetchScalarGridSpec(
            num_scalar_prefetch=0,
            grid=(pl.cdiv(n, blk),),
            in_specs=[pl.BlockSpec((blk,), lambda i: (i,))],
            out_specs=pl.BlockSpec((blk,), lambda i: (i,)),
        ),
        compiler_params=cparams,
        cost_estimate=cost,
    )(x.reshape(-1))
    return y.reshape(orig_shape)


def _mish_ref(x):
    # Numerically stable softplus matching torch.nn.Softplus(beta=1, threshold=20).
    xf = x.astype(jnp.float32)
    sp = jnp.log1p(jnp.exp(-jnp.abs(xf))) + jnp.maximum(xf, 0.0)
    return (xf * jnp.tanh(sp)).astype(x.dtype)


if __name__ == "__main__":
    key = jax.random.PRNGKey(0)
    # 3D U-Net style activation tensor: (N, C, D, H, W)
    x = jax.random.normal(key, (2, 4, 8, 16, 16), dtype=jnp.float32) * 5.0

    y = jax.block_until_ready(mish(x))

    y_ref = _mish_ref(x)
    assert y.shape == x.shape and y.dtype == x.dtype
    assert jnp.allclose(y, y_ref, atol=1e-5, rtol=1e-5)
    print("KERNEL_OK")
</pallas_src>

<mosaic_0001>
module attributes {stable_mosaic.version = 11 : i64} {
  func.func @_mish_kernel(%arg0: i32, %arg1: memref<128x128xf32, #tpu.memory_space<vmem>>, %arg2: memref<128x128xf32, #tpu.memory_space<vmem>>) attributes {dimension_semantics = [#tpu.dimension_semantics<parallel>], iteration_bounds = array<i64: 1>, scalar_prefetch = 0 : i64, scratch_operands = 0 : i64, tpu.core_type = #tpu.core_type<tc>, window_params = [{transform_indices = @transform_0, window_bounds = array<i64: 128, 128>}, {transform_indices = @transform_1, window_bounds = array<i64: 128, 128>}]} {
    %c0 = arith.constant 0 : index
    %c0_0 = arith.constant 0 : index
    %0 = vector.load %arg1[%c0, %c0_0] : memref<128x128xf32, #tpu.memory_space<vmem>>, vector<128x128xf32>
    %cst = arith.constant 2.000000e+01 : f32
    %1 = vector.broadcast %cst : f32 to vector<128x128xf32>
    %2 = arith.minimumf %0, %1 : vector<128x128xf32>
    %3 = math.exp %2 : vector<128x128xf32>
    %cst_1 = arith.constant 2.000000e+00 : f32
    %4 = vector.broadcast %cst_1 : f32 to vector<128x128xf32>
    %5 = arith.addf %3, %4 : vector<128x128xf32>
    %6 = arith.mulf %3, %5 : vector<128x128xf32>
    %cst_2 = arith.constant 2.000000e+00 : f32
    %7 = vector.broadcast %cst_2 : f32 to vector<128x128xf32>
    %8 = arith.addf %6, %7 : vector<128x128xf32>
    %9 = arith.divf %6, %8 : vector<128x128xf32>
    %10 = arith.mulf %0, %9 : vector<128x128xf32>
    %c0_3 = arith.constant 0 : index
    %c0_4 = arith.constant 0 : index
    %11 = vector.load %arg2[%c0_3, %c0_4] : memref<128x128xf32, #tpu.memory_space<vmem>>, vector<128x128xf32>
    tpu.vector_store %arg2[%c0_3, %c0_4], %10 {strides = array<i32>} : memref<128x128xf32, #tpu.memory_space<vmem>>, vector<128x128xf32>,
    return
  }
  func.func @transform_0(%arg0: i32) -> (i32, i32) {
    %c0_i32 = arith.constant 0 : i32
    %c0_i32_0 = arith.constant 0 : i32
    return %arg0, %c0_i32 : i32, i32
  }
  func.func @transform_1(%arg0: i32) -> (i32, i32) {
    %c0_i32 = arith.constant 0 : i32
    %c0_i32_0 = arith.constant 0 : i32
    return %arg0, %c0_i32 : i32, i32
  }
}

</mosaic_0001>

<bundles_post_ra>
// kernel: tpu_custom_call.1
= control target key start
LH: loop header
LB: loop body
LE: loop exit
PB: predicated region body
PF: predicated region fallthrough
CT: control target
= control target key end

     0   :  { %6 = vsyncpa [#allocation3], 0  ;;  %s504_s0 = inlined_call_operand.hbm [shape: f32[128,128], index: 0, kind: input, shape index: {}]   ;;  %s505_s1 = inlined_call_operand.hbm [shape: f32[128,128], index: 1, kind: output, shape index: {}]  }
   0x1   :  { %7 = vsyncpa [#allocation4], 0  ;;  %s332_s6 = smov [#allocation2]   ;;  %s284_s10 = scalar_lea.hbm %s504_s0, 2048 }
   0x2   :  { %s13_s7 = sshll.u32 %s332_s6, 4  ;;  %p285_p0 = scmp.ne.s32.totalorder %s504_s0, %s284_s10  ;;  %s14_s7 = int_to_ptr.vmem [resolvable:$true] %s13_s7 }
   0x3   :  { %p288_p1 = scmp.lt.u32.totalorder %s284_s10, %s504_s0 }
   0x5   :  { %p290_p2 = pnand %p288_p1, %p285_p0 }
   0x7   :  { %293 = shalt.err (!%p290_p2)
}
   0x8   :  { %s294_s15 = scalar_lea.vmem %s14_s7, 2048  ;;  %p299_p4 = scmp.lt.s32.totalorder %s14_s7, %s14_s7 }
   0x9   :  { %p295_p3 = scmp.ne.s32.totalorder %s14_s7, %s294_s15  ;;  %p300_p5 = scmp.lt.s32.totalorder %s294_s15, %s294_s15 }
   0xb   :  { %p301_p6 = por %p300_p5, %p299_p4 }
   0xd   :  { %p302_p7 = pnand %p301_p6, %p295_p3 }
   0xf   :  { %305 = shalt.err (!%p302_p7)
}
  0x10   :  { %s333_s16 = smov 128   ;;  %s334_s17 = smov 8  }
  0x11   :  { %19 = dma.hbm_to_vmem [thread:$0]  %s504_s0, 2048, %s14_s7, [#allocation3], %s333_s16, %s333_s16, %s334_s17  }
  0x12   :  { %328 = dma.done.wait [#allocation3], 2048  }
  0x13   :  { %329 = vsyncadd [#allocation3], 4294965248  ;;  %v361_v0 = vld [vmem:[#allocation2] sm:$0xff]  ;;  %v363_v1 = vld [vmem:[#allocation2 + $0x8] sm:$0xff]  ;;  %s335_s0 = smov [#allocation5]  }
  0x14   :  { %v365_v2 = vld [vmem:[#allocation2 + $0x10] sm:$0xff]  ;;  %v39_v3 = vmin.f32 %v361_v0, 20.0  ;;  %v40_v4 = vmin.f32 %v363_v1, 20.0  ;;  %v370_v6 = vld [vmem:[#allocation2 + $0x18] sm:$0xff]  ;;  %v372_v7 = vld [vmem:[#allocation2 + $0x20] sm:$0xff]  ;;  %s204_s20 = sshll.u32 %s335_s0, 4  ;;  %s205_s20 = int_to_ptr.vmem [resolvable:$true] %s204_s20 }
  0x15   :  { %v41_v5 = vmin.f32 %v365_v2, 20.0  ;;  %v374_v8 = vld [vmem:[#allocation2 + $0x28] sm:$0xff]  ;;  %v42_v9 = vmin.f32 %v370_v6, 20.0  ;;  %v43_v10 = vmin.f32 %v372_v7, 20.0  ;;  %v379_v12 = vld [vmem:[#allocation2 + $0x30] sm:$0xff]  ;;  %v381_v13 = vld [vmem:[#allocation2 + $0x38] sm:$0xff]  ;;  %p311_p9 = scmp.lt.s32.totalorder %s205_s20, %s205_s20 }
  0x16   :  { %v44_v11 = vmin.f32 %v374_v8, 20.0  ;;  %v383_v14 = vld [vmem:[#allocation2 + $0x40] sm:$0xff]  ;;  %v55_v15 = vmul.f32 1.442695, %v39_v3  ;;  %v57_v16 = vmul.f32 1.442695, %v40_v4 }
  0x17   :  { %v59_v17 = vmul.f32 1.442695, %v41_v5  ;;  %v61_v18 = vmul.f32 1.442695, %v42_v9  ;;  %v63_v19 = vmul.f32 1.442695, %v43_v10 }
  0x18   :  { %220 = vpow2.f32 %v55_v15  ;;  %v45_v20 = vmin.f32 %v379_v12, 20.0  ;;  %v46_v21 = vmin.f32 %v381_v13, 20.0  ;;  %v47_v22 = vmin.f32 %v383_v14, 20.0  ;;  %v388_v23 = vld [vmem:[#allocation2 + $0x48] sm:$0xff]  ;;  %v390_v24 = vld [vmem:[#allocation2 + $0x50] sm:$0xff]  ;;  %v392_v25 = vld [vmem:[#allocation2 + $0x58] sm:$0xff] }
  0x19   :  { %222 = vpow2.f32 %v57_v16  ;;  %v65_v26 = vmul.f32 1.442695, %v44_v11  ;;  %v48_v27 = vmin.f32 %v388_v23, 20.0  ;;  %v395_v28 = vld [vmem:[#allocation2 + $0x60] sm:$0xff]  ;;  %v49_v30 = vmin.f32 %v390_v24, 20.0  ;;  %v398_v31 = vld [vmem:[#allocation2 + $0x68] sm:$0xff] }
  0x1a   :  { %224 = vpow2.f32 %v59_v17  ;;  %v67_v29 = vmul.f32 1.442695, %v45_v20  ;;  %v69_v32 = vmul.f32 1.442695, %v46_v21  ;;  %v50_v33 = vmin.f32 %v392_v25, 20.0  ;;  %v401_v34 = vld [vmem:[#allocation2 + $0x70] sm:$0xff] }
  0x1b   :  { %226 = vpow2.f32 %v61_v18  ;;  %v71_v35 = vmul.f32 1.442695, %v47_v22  ;;  %v51_v36 = vmin.f32 %v395_v28, 20.0  ;;  %v404_v37 = vld [vmem:[#allocation2 + $0x78] sm:$0xff]  ;;  %v73_v38 = vmul.f32 1.442695, %v48_v27 }
  0x1c   :  { %228 = vpow2.f32 %v63_v19  ;;  %v52_v39 = vmin.f32 %v398_v31, 20.0  ;;  %v75_v40 = vmul.f32 1.442695, %v49_v30  ;;  %v53_v41 = vmin.f32 %v401_v34, 20.0  ;;  %s306_s21 = scalar_lea.vmem %s205_s20, 2048 }
  0x1d   :  { %230 = vpow2.f32 %v65_v26  ;;  %v77_v42 = vmul.f32 1.442695, %v50_v33  ;;  %v54_v43 = vmin.f32 %v404_v37, 20.0  ;;  %v79_v44 = vmul.f32 1.442695, %v51_v36  ;;  %p307_p8 = scmp.ne.s32.totalorder %s205_s20, %s306_s21  ;;  %p312_p10 = scmp.lt.s32.totalorder %s306_s21, %s306_s21 }
  0x1e   :  { %232 = vpow2.f32 %v67_v29  ;;  %v81_v45 = vmul.f32 1.442695, %v52_v39  ;;  %v83_v47 = vmul.f32 1.442695, %v53_v41 }
  0x1f   :  { %234 = vpow2.f32 %v69_v32  ;;  %v85_v50 = vmul.f32 1.442695, %v54_v43  ;;  %p313_p11 = por %p312_p10, %p311_p9 }
  0x20   :  { %236 = vpow2.f32 %v71_v35 }
  0x21   :  { %238 = vpow2.f32 %v73_v38  ;;  %p314_p12 = pnand %p313_p11, %p307_p8 }
  0x22   :  { %v221_v46 = vpop.eup %220  ;;  %240 = vpow2.f32 %v75_v40 }
  0x23   :  { %v223_v48 = vpop.eup %222  ;;  %v87_v49 = vadd.f32 2.0, %v221_v46  ;;  %242 = vpow2.f32 %v77_v42 }
  0x24   :  { %v225_v51 = vpop.eup %224  ;;  %v88_v52 = vadd.f32 2.0, %v223_v48  ;;  %244 = vpow2.f32 %v79_v44 }
  0x25   :  { %v227_v53 = vpop.eup %226  ;;  %v409_v54 = vmul.f32 %v221_v46, %v87_v49  ;;  %v89_v55 = vadd.f32 2.0, %v225_v51  ;;  %246 = vpow2.f32 %v81_v45 }
  0x26   :  { %v229_v56 = vpop.eup %228  ;;  %v411_v57 = vmul.f32 %v223_v48, %v88_v52  ;;  %v90_v58 = vadd.f32 2.0, %v227_v53  ;;  %248 = vpow2.f32 %v83_v47 }
  0x27   :  { %v231_v59 = vpop.eup %230  ;;  %v119_v60 = vadd.f32 2.0, %v409_v54  ;;  %v414_v61 = vmul.f32 %v225_v51, %v89_v55  ;;  %v91_v62 = vadd.f32 2.0, %v229_v56  ;;  %250 = vpow2.f32 %v85_v50 }
  0x28   :  { %v233_v63 = vpop.eup %232  ;;  %v120_v3 = vadd.f32 2.0, %v411_v57  ;;  %v417_v4 = vmul.f32 %v227_v53, %v90_v58  ;;  %v92_v5 = vadd.f32 2.0, %v231_v59 }
  0x29   :  { %v235_v9 = vpop.eup %234  ;;  %252 = vrcp.f32 %v119_v60  ;;  %v121_v10 = vadd.f32 2.0, %v414_v61  ;;  %v420_v11 = vmul.f32 %v229_v56, %v91_v62  ;;  %v93_v15 = vadd.f32 2.0, %v233_v63 }
  0x2a   :  { %v237_v16 = vpop.eup %236  ;;  %254 = vrcp.f32 %v120_v3  ;;  %v122_v17 = vadd.f32 2.0, %v417_v4  ;;  %v423_v18 = vmul.f32 %v231_v59, %v92_v5  ;;  %v94_v19 = vadd.f32 2.0, %v235_v9 }
  0x2b   :  { %v239_v20 = vpop.eup %238  ;;  %256 = vrcp.f32 %v121_v10  ;;  %v123_v21 = vadd.f32 2.0, %v420_v11  ;;  %v426_v22 = vmul.f32 %v233_v63, %v93_v15  ;;  %v95_v26 = vadd.f32 2.0, %v237_v16 }
  0x2c   :  { %v241_v27 = vpop.eup %240  ;;  %258 = vrcp.f32 %v122_v17  ;;  %v124_v29 = vadd.f32 2.0, %v423_v18  ;;  %v429_v30 = vmul.f32 %v235_v9, %v94_v19  ;;  %v96_v32 = vadd.f32 2.0, %v239_v20 }
  0x2d   :  { %v243_v33 = vpop.eup %242  ;;  %260 = vrcp.f32 %v123_v21  ;;  %v125_v35 = vadd.f32 2.0, %v426_v22  ;;  %v432_v36 = vmul.f32 %v237_v16, %v95_v26  ;;  %v97_v38 = vadd.f32 2.0, %v241_v27 }
  0x2e   :  { %v245_v39 = vpop.eup %244  ;;  %262 = vrcp.f32 %v124_v29  ;;  %v126_v40 = vadd.f32 2.0, %v429_v30  ;;  %v435_v41 = vmul.f32 %v239_v20, %v96_v32  ;;  %v98_v42 = vadd.f32 2.0, %v243_v33 }
  0x2f   :  { %v247_v43 = vpop.eup %246  ;;  %264 = vrcp.f32 %v125_v35  ;;  %v127_v44 = vadd.f32 2.0, %v432_v36  ;;  %v438_v45 = vmul.f32 %v241_v27, %v97_v38  ;;  %v99_v46 = vadd.f32 2.0, %v245_v39 }
  0x30   :  { %v249_v47 = vpop.eup %248  ;;  %266 = vrcp.f32 %v126_v40  ;;  %v128_v48 = vadd.f32 2.0, %v435_v41  ;;  %v441_v49 = vmul.f32 %v243_v33, %v98_v42  ;;  %v100_v50 = vadd.f32 2.0, %v247_v43 }
  0x31   :  { %v251_v51 = vpop.eup %250  ;;  %268 = vrcp.f32 %v127_v44  ;;  %v129_v52 = vadd.f32 2.0, %v438_v45  ;;  %v444_v53 = vmul.f32 %v245_v39, %v99_v46  ;;  %v101_v55 = vadd.f32 2.0, %v249_v47 }
  0x32   :  { %270 = vrcp.f32 %v128_v48  ;;  %v130_v56 = vadd.f32 2.0, %v441_v49  ;;  %v447_v58 = vmul.f32 %v247_v43, %v100_v50  ;;  %v102_v59 = vadd.f32 2.0, %v251_v51 }
  0x33   :  { %v253_v60 = vpop.eup %252  ;;  %272 = vrcp.f32 %v129_v52  ;;  %v131_v62 = vadd.f32 2.0, %v444_v53  ;;  %v450_v63 = vmul.f32 %v249_v47, %v101_v55 }
  0x34   :  { %v255_v3 = vpop.eup %254  ;;  %v136_v5 = vmul.f32 %v253_v60, %v409_v54  ;;  %274 = vrcp.f32 %v130_v56  ;;  %v132_v9 = vadd.f32 2.0, %v447_v58  ;;  %v454_v10 = vmul.f32 %v251_v51, %v102_v59 }
  0x35   :  { %v257_v15 = vpop.eup %256  ;;  %v138_v16 = vmul.f32 %v255_v3, %v411_v57  ;;  %276 = vrcp.f32 %v131_v62  ;;  %v133_v17 = vadd.f32 2.0, %v450_v63 }
  0x36   :  { %v259_v19 = vpop.eup %258  ;;  %v167_v20 = vmul.f32 %v136_v5, %v361_v0  ;;  %v140_v21 = vmul.f32 %v257_v15, %v414_v61  ;;  %278 = vrcp.f32 %v132_v9  ;;  %v134_v26 = vadd.f32 2.0, %v454_v10 }
  0x37   :  { %v261_v54 = vpop.eup %260  ;;  %v168_v27 = vmul.f32 %v138_v16, %v363_v1  ;;  %v142_v29 = vmul.f32 %v259_v19, %v417_v4  ;;  %280 = vrcp.f32 %v133_v17 }
  0x38   :  { %v263_v32 = vpop.eup %262  ;;  %183 = vst [vmem:[#allocation5] sm:$0xff] %v167_v20  ;;  %v169_v57 = vmul.f32 %v140_v21, %v365_v2  ;;  %v144_v33 = vmul.f32 %v261_v54, %v420_v11  ;;  %282 = vrcp.f32 %v134_v26 }
  0x39   :  { %v265_v35 = vpop.eup %264  ;;  %184 = vst [vmem:[#allocation5 + $0x8] sm:$0xff] %v168_v27  ;;  %v170_v0 = vmul.f32 %v142_v29, %v370_v6  ;;  %v146_v61 = vmul.f32 %v263_v32, %v423_v18 }
  0x3a   :  { %v267_v38 = vpop.eup %266  ;;  %185 = vst [vmem:[#allocation5 + $0x10] sm:$0xff] %v169_v57  ;;  %v171_v1 = vmul.f32 %v144_v33, %v372_v7  ;;  %v148_v4 = vmul.f32 %v265_v35, %v426_v22 }
  0x3b   :  { %v269_v39 = vpop.eup %268  ;;  %186 = vst [vmem:[#allocation5 + $0x18] sm:$0xff] %v170_v0  ;;  %v172_v40 = vmul.f32 %v146_v61, %v374_v8  ;;  %v150_v2 = vmul.f32 %v267_v38, %v429_v30 }
  0x3c   :  { %v271_v11 = vpop.eup %270  ;;  %187 = vst [vmem:[#allocation5 + $0x20] sm:$0xff] %v171_v1  ;;  %v173_v42 = vmul.f32 %v148_v4, %v379_v12  ;;  %v152_v6 = vmul.f32 %v269_v39, %v432_v36 }
  0x3d   :  { %v273_v43 = vpop.eup %272  ;;  %188 = vst [vmem:[#allocation5 + $0x28] sm:$0xff] %v172_v40  ;;  %v174_v18 = vmul.f32 %v150_v2, %v381_v13  ;;  %v154_v7 = vmul.f32 %v271_v11, %v435_v41 }
  0x3e   :  { %v275_v44 = vpop.eup %274  ;;  %189 = vst [vmem:[#allocation5 + $0x30] sm:$0xff] %v173_v42  ;;  %v175_v22 = vmul.f32 %v152_v6, %v383_v14  ;;  %v156_v8 = vmul.f32 %v273_v43, %v438_v45 }
  0x3f   :  { %v277_v46 = vpop.eup %276  ;;  %190 = vst [vmem:[#allocation5 + $0x38] sm:$0xff] %v174_v18  ;;  %v176_v30 = vmul.f32 %v154_v7, %v388_v23  ;;  %v158_v12 = vmul.f32 %v275_v44, %v441_v49 }
  0x40   :  { %v279_v47 = vpop.eup %278  ;;  %191 = vst [vmem:[#allocation5 + $0x40] sm:$0xff] %v175_v22  ;;  %v177_v36 = vmul.f32 %v156_v8, %v390_v24  ;;  %v160_v13 = vmul.f32 %v277_v46, %v444_v53 }
  0x41   :  { %v281_v48 = vpop.eup %280  ;;  %192 = vst [vmem:[#allocation5 + $0x48] sm:$0xff] %v176_v30  ;;  %v178_v41 = vmul.f32 %v158_v12, %v392_v25  ;;  %v162_v14 = vmul.f32 %v279_v47, %v447_v58 }
  0x42   :  { %v283_v50 = vpop.eup %282  ;;  %193 = vst [vmem:[#allocation5 + $0x50] sm:$0xff] %v177_v36  ;;  %v179_v45 = vmul.f32 %v160_v13, %v395_v28  ;;  %v164_v23 = vmul.f32 %v281_v48, %v450_v63 }
  0x43   :  { %194 = vst [vmem:[#allocation5 + $0x58] sm:$0xff] %v178_v41  ;;  %v180_v49 = vmul.f32 %v162_v14, %v398_v31  ;;  %v166_v24 = vmul.f32 %v283_v50, %v454_v10 }
  0x44   :  { %195 = vst [vmem:[#allocation5 + $0x60] sm:$0xff] %v179_v45  ;;  %v181_v51 = vmul.f32 %v164_v23, %v401_v34 }
  0x45   :  { %196 = vst [vmem:[#allocation5 + $0x68] sm:$0xff] %v180_v49  ;;  %v182_v25 = vmul.f32 %v166_v24, %v404_v37 }
  0x46   :  { %197 = vst [vmem:[#allocation5 + $0x70] sm:$0xff] %v181_v51 }
  0x47   :  { %198 = vst [vmem:[#allocation5 + $0x78] sm:$0xff] %v182_v25 }
  0x48   :  { %317 = shalt.err (!%p314_p12)
}
  0x49   :  { %s318_s24 = scalar_lea.hbm %s505_s1, 2048 }
  0x4a   :  { %p319_p13 = scmp.ne.s32.totalorder %s505_s1, %s318_s24  ;;  %p322_p0 = scmp.lt.u32.totalorder %s318_s24, %s505_s1 }
  0x4c   :  { %p324_p1 = pnand %p322_p0, %p319_p13 }
  0x4e   :  { %327 = shalt.err (!%p324_p1)
}
  0x4f   :  { %210 = dma.vmem_to_hbm [thread:$0]  %s205_s20, 2048, %s505_s1, [#allocation4], %s333_s16, %s333_s16, %s334_s17  }
  0x50   :  { %330 = dma.done.wait [#allocation4], 2048  }
  0x51   :  { %331 = vsyncadd [#allocation4], 4294965248 }
  0x52   :  { %214 = vsyncpa [#allocation3], 1 }
  0x53   :  { %215 = vsyncpa [#allocation4], 1 }

</bundles_post_ra>
